<compile_context>
chip_gen: v7x
topology: tpu7x:2x2x1
jax: 0.10.0
libtpu: 0.0.40
codegen_flags: <defaults>
</compile_context>

<pallas_src>
import math

import jax
import jax.numpy as jnp
from jax.experimental import pallas as pl
from jax.experimental.pallas import tpu as pltpu


# ---------------------------------------------------------------------------
# Fused PALayer kernel (one (C, t) tile of one image per grid step)
# ---------------------------------------------------------------------------
def _pa_fused_kernel(x_ref, w1t_ref, b1_ref, w2_ref, b2_ref, o_ref):
    # conv1x1 #1 (C -> C//8): (C8, C) @ (C, t) on the MXU, f32 accumulate.
    y1 = jnp.dot(w1t_ref[...], x_ref[...], preferred_element_type=jnp.float32)
    y1 = jnp.maximum(y1 + b1_ref[...], 0.0)                     # (C8, t)

    # conv1x1 #2 (C//8 -> 1): sublane reduction (XLU) instead of a 1-wide matmul.
    g = jnp.sum(y1 * w2_ref[...], axis=0, keepdims=True) + b2_ref[...]
    gate = jax.nn.sigmoid(g)                                    # (1, t)

    # Reload x from VMEM (don't hold it live across the dot) and write once;
    # (1, t) gate broadcasts over the C sublanes.
    o_ref[...] = (x_ref[...] * gate).astype(o_ref.dtype)


def _pick_t_hw(HW, C, N):
    """Lane-tile size along H*W: big, lane-dense, VMEM-safe, megacore-friendly."""
    # Double-buffered x + out blocks cost 16 * C * t bytes; keep under ~12 MiB
    # so v5e's 16 MiB default scoped VMEM is fine (v6e/v7x have more headroom).
    budget = 12 << 20
    t_cap = max(128, min(4096, budget // (16 * C)))
    t_cap = (t_cap // 128) * 128
    t = HW if HW <= t_cap else t_cap          # full extent allowed even if !%128

    # Keep >= ~8 grid steps so the two v7x TensorCores both get work.
    min_steps = 8
    if N * (-(-HW // t)) < min_steps and HW > 128:
        per_img = -(-min_steps // N)
        t_par = max(128, ((-(-HW // per_img)) // 128) * 128)     # multiple of 128
        if t_par < t:
            t = t_par
    return t


def pa_layer_fused(x_nchw, w1, b1, w2, b2):
    """PALayer forward.

    x_nchw : (N, C, H, W) float32
    w1     : (C, C//8)    first 1x1 conv weight (in x out)
    b1     : (C//8,)
    w2     : (C//8,)      second 1x1 conv weight (single output channel)
    b2     : ()           scalar bias
    returns (N, C, H, W)
    """
    N, C, H, W = x_nchw.shape
    C8 = w1.shape[1]
    assert w1.shape == (C, C8) and b1.shape == (C8,) and w2.shape == (C8,)
    HW = H * W

    x3 = x_nchw.reshape(N, C, HW)             # free reshape, no data movement

    t = _pick_t_hw(HW, C, N)
    grid = (N, pl.cdiv(HW, t))                # ragged last HW block is clipped

    w1t = jnp.transpose(w1)                   # (C8, C), tiny
    b1c = b1.reshape(C8, 1)
    w2c = w2.reshape(C8, 1)
    b2c = jnp.asarray(b2, jnp.float32).reshape(1, 1)

    out = pl.pallas_call(
        _pa_fused_kernel,
        out_shape=jax.ShapeDtypeStruct((N, C, HW), x_nchw.dtype),
        grid_spec=pltpu.PrefetchScalarGridSpec(
            num_scalar_prefetch=0,
            grid=grid,
            in_specs=[
                pl.BlockSpec((None, C, t), lambda n, j: (n, 0, j)),   # x tile
                pl.BlockSpec((C8, C), lambda n, j: (0, 0)),           # w1^T
                pl.BlockSpec((C8, 1), lambda n, j: (0, 0)),           # b1
                pl.BlockSpec((C8, 1), lambda n, j: (0, 0)),           # w2
                pl.BlockSpec((1, 1), lambda n, j: (0, 0)),            # b2
            ],
            out_specs=pl.BlockSpec((None, C, t), lambda n, j: (n, 0, j)),
        ),
        compiler_params=pltpu.CompilerParams(
            dimension_semantics=("parallel", "parallel")),
        cost_estimate=pl.CostEstimate(
            flops=2 * N * HW * C * C8 + N * HW * (2 * C8 + C),
            transcendentals=N * HW,
            bytes_accessed=2 * N * HW * C * 4),
    )(x3, w1t, b1c, w2c, b2c)

    return out.reshape(N, C, H, W)            # free reshape back


# ---------------------------------------------------------------------------
# Deterministic parameter init (mirrors nn.Conv2d default uniform init)
# ---------------------------------------------------------------------------
def init_pa_params(channel, seed=0):
    key = jax.random.PRNGKey(seed)
    k1, k2, k3, k4 = jax.random.split(key, 4)
    c8 = channel // 8
    s1 = 1.0 / math.sqrt(channel)      # fan_in of conv1 (1x1, C in)
    s2 = 1.0 / math.sqrt(c8)           # fan_in of conv2 (1x1, C//8 in)
    w1 = jax.random.uniform(k1, (channel, c8), jnp.float32, -s1, s1)
    b1 = jax.random.uniform(k2, (c8,), jnp.float32, -s1, s1)
    w2 = jax.random.uniform(k3, (c8,), jnp.float32, -s2, s2)
    b2 = jax.random.uniform(k4, (), jnp.float32, -s2, s2)
    return w1, b1, w2, b2


# ---------------------------------------------------------------------------
# Pure-JAX reference for correctness check
# ---------------------------------------------------------------------------
def pa_layer_ref(x_nchw, w1, b1, w2, b2):
    x = jnp.transpose(x_nchw, (0, 2, 3, 1))                   # NHWC
    y1 = jnp.maximum(jnp.einsum("nhwc,cd->nhwd", x, w1) + b1, 0.0)
    y2 = jax.nn.sigmoid(jnp.einsum("nhwd,d->nhw", y1, w2)[..., None] + b2)
    out = x * y2
    return jnp.transpose(out, (0, 3, 1, 2))


if __name__ == "__main__":
    batch, channel, height, width = 2, 64, 16, 16
    w1, b1, w2, b2 = init_pa_params(channel, seed=0)
    x = jax.random.normal(jax.random.PRNGKey(0),
                          (batch, channel, height, width), jnp.float32)

    fused = jax.jit(pa_layer_fused)
    out = fused(x, w1, b1, w2, b2)
    jax.block_until_ready(out)

    ref = pa_layer_ref(x, w1, b1, w2, b2)
    assert out.shape == (batch, channel, height, width)
    assert jnp.allclose(out, ref, atol=1e-5, rtol=1e-5), (
        float(jnp.max(jnp.abs(out - ref))))
    print("KERNEL_OK")
</pallas_src>

<mosaic_0001>
module attributes {stable_mosaic.version = 11 : i64} {
  func.func @_pa_fused_kernel(%arg0: i32, %arg1: i32, %arg2: memref<1x64x128xf32, #tpu.memory_space<vmem>>, %arg3: memref<8x64xf32, #tpu.memory_space<vmem>>, %arg4: memref<8x1xf32, #tpu.memory_space<vmem>>, %arg5: memref<8x1xf32, #tpu.memory_space<vmem>>, %arg6: memref<1x1xf32, #tpu.memory_space<vmem>>, %arg7: memref<1x64x128xf32, #tpu.memory_space<vmem>>) attributes {dimension_semantics = [#tpu.dimension_semantics<parallel>, #tpu.dimension_semantics<parallel>], iteration_bounds = array<i64: 2, 2>, scalar_prefetch = 0 : i64, scratch_operands = 0 : i64, tpu.core_type = #tpu.core_type<tc>, window_params = [{transform_indices = @transform_0, window_bounds = array<i64: 1, 64, 128>}, {pipeline_mode = #tpu.pipeline_mode<synchronous>, transform_indices = @transform_1, window_bounds = array<i64: 8, 64>}, {pipeline_mode = #tpu.pipeline_mode<synchronous>, transform_indices = @transform_2, window_bounds = array<i64: 8, 1>}, {pipeline_mode = #tpu.pipeline_mode<synchronous>, transform_indices = @transform_3, window_bounds = array<i64: 8, 1>}, {pipeline_mode = #tpu.pipeline_mode<synchronous>, transform_indices = @transform_4, window_bounds = array<i64: 1, 1>}, {transform_indices = @transform_5, window_bounds = array<i64: 1, 64, 128>}]} {
    %c0 = arith.constant 0 : index
    %c0_0 = arith.constant 0 : index
    %0 = vector.load %arg3[%c0, %c0_0] : memref<8x64xf32, #tpu.memory_space<vmem>>, vector<8x64xf32>
    %c0_1 = arith.constant 0 : index
    %c0_2 = arith.constant 0 : index
    %c0_3 = arith.constant 0 : index
    %1 = vector.load %arg2[%c0_1, %c0_2, %c0_3] : memref<1x64x128xf32, #tpu.memory_space<vmem>>, vector<1x64x128xf32>
    %2 = vector.shape_cast %1 : vector<1x64x128xf32> to vector<64x128xf32>
    %cst = arith.constant dense<0.000000e+00> : vector<8x128xf32>
    %3 = tpu.matmul %0, %2, %cst {dimension_numbers = #tpu.dot_dimension_numbers<[1], [0], [0], [1], [0, 0, 1, 1], [], []>} : vector<8x64xf32>, vector<64x128xf32>, vector<8x128xf32> -> vector<8x128xf32>
    %c0_4 = arith.constant 0 : index
    %c0_5 = arith.constant 0 : index
    %4 = vector.load %arg4[%c0_4, %c0_5] : memref<8x1xf32, #tpu.memory_space<vmem>>, vector<8x1xf32>
    %5 = vector.broadcast %4 : vector<8x1xf32> to vector<8x128xf32>
    %6 = arith.addf %3, %5 : vector<8x128xf32>
    %cst_6 = arith.constant 0.000000e+00 : f32
    %7 = vector.broadcast %cst_6 : f32 to vector<8x128xf32>
    %8 = arith.maximumf %6, %7 : vector<8x128xf32>
    %c0_7 = arith.constant 0 : index
    %c0_8 = arith.constant 0 : index
    %9 = vector.load %arg5[%c0_7, %c0_8] : memref<8x1xf32, #tpu.memory_space<vmem>>, vector<8x1xf32>
    %10 = vector.broadcast %9 : vector<8x1xf32> to vector<8x128xf32>
    %11 = arith.mulf %8, %10 : vector<8x128xf32>
    %cst_9 = arith.constant dense<0.000000e+00> : vector<128xf32>
    %12 = vector.multi_reduction <add>, %11, %cst_9 [0] : vector<8x128xf32> to vector<128xf32>
    %13 = vector.shape_cast %12 : vector<128xf32> to vector<1x128xf32>
    %c0_10 = arith.constant 0 : index
    %c0_11 = arith.constant 0 : index
    %14 = vector.load %arg6[%c0_10, %c0_11] : memref<1x1xf32, #tpu.memory_space<vmem>>, vector<1x1xf32>
    %15 = vector.broadcast %14 : vector<1x1xf32> to vector<1x128xf32>
    %16 = arith.addf %13, %15 : vector<1x128xf32>
    %17 = arith.negf %16 : vector<1x128xf32>
    %18 = math.exp %17 : vector<1x128xf32>
    %cst_12 = arith.constant 1.000000e+00 : f32
    %19 = vector.broadcast %cst_12 : f32 to vector<1x128xf32>
    %20 = arith.addf %19, %18 : vector<1x128xf32>
    %21 = arith.divf %19, %20 : vector<1x128xf32>
    %c0_13 = arith.constant 0 : index
    %c0_14 = arith.constant 0 : index
    %c0_15 = arith.constant 0 : index
    %22 = vector.load %arg2[%c0_13, %c0_14, %c0_15] : memref<1x64x128xf32, #tpu.memory_space<vmem>>, vector<1x64x128xf32>
    %23 = vector.shape_cast %22 : vector<1x64x128xf32> to vector<64x128xf32>
    %24 = vector.broadcast %21 : vector<1x128xf32> to vector<64x128xf32>
    %25 = arith.mulf %23, %24 : vector<64x128xf32>
    %c0_16 = arith.constant 0 : index
    %c0_17 = arith.constant 0 : index
    %c0_18 = arith.constant 0 : index
    %26 = vector.load %arg7[%c0_16, %c0_17, %c0_18] : memref<1x64x128xf32, #tpu.memory_space<vmem>>, vector<1x64x128xf32>
    %27 = vector.shape_cast %26 : vector<1x64x128xf32> to vector<64x128xf32>
    %28 = vector.shape_cast %25 : vector<64x128xf32> to vector<1x64x128xf32>
    tpu.vector_store %arg7[%c0_16, %c0_17, %c0_18], %28 {strides = array<i32>} : memref<1x64x128xf32, #tpu.memory_space<vmem>>, vector<1x64x128xf32>,
    return
  }
  func.func @transform_0(%arg0: i32, %arg1: i32) -> (i32, i32, i32) {
    %c0_i32 = arith.constant 0 : i32
    %c0_i32_0 = arith.constant 0 : i32
    return %arg0, %c0_i32, %arg1 : i32, i32, i32
  }
  func.func @transform_1(%arg0: i32, %arg1: i32) -> (i32, i32) {
    %c0_i32 = arith.constant 0 : i32
    %c0_i32_0 = arith.constant 0 : i32
    %c0_i32_1 = arith.constant 0 : i32
    return %c0_i32, %c0_i32_0 : i32, i32
  }
  func.func @transform_2(%arg0: i32, %arg1: i32) -> (i32, i32) {
    %c0_i32 = arith.constant 0 : i32
    %c0_i32_0 = arith.constant 0 : i32
    %c0_i32_1 = arith.constant 0 : i32
    return %c0_i32, %c0_i32_0 : i32, i32
  }
  func.func @transform_3(%arg0: i32, %arg1: i32) -> (i32, i32) {
    %c0_i32 = arith.constant 0 : i32
    %c0_i32_0 = arith.constant 0 : i32
    %c0_i32_1 = arith.constant 0 : i32
    return %c0_i32, %c0_i32_0 : i32, i32
  }
  func.func @transform_4(%arg0: i32, %arg1: i32) -> (i32, i32) {
    %c0_i32 = arith.constant 0 : i32
    %c0_i32_0 = arith.constant 0 : i32
    %c0_i32_1 = arith.constant 0 : i32
    return %c0_i32, %c0_i32_0 : i32, i32
  }
  func.func @transform_5(%arg0: i32, %arg1: i32) -> (i32, i32, i32) {
    %c0_i32 = arith.constant 0 : i32
    %c0_i32_0 = arith.constant 0 : i32
    return %arg0, %c0_i32, %arg1 : i32, i32, i32
  }
}

</mosaic_0001>

<bundles_post_ra>
// kernel: pa_layer_fused.1
= control target key start
LH: loop header
LB: loop body
LE: loop exit
PB: predicated region body
PF: predicated region fallthrough
CT: control target
= control target key end

     0   :  { %s905_s0 = inlined_call_operand.vmem [shape: f32[2,64,256], index: 0, kind: input, shape index: {}]   ;;  %s906_s1 = inlined_call_operand.vmem [shape: f32[8,64], index: 1, kind: input, shape index: {}]   ;;  %s907_s2 = inlined_call_operand.vmem [shape: f32[8,1], index: 2, kind: input, shape index: {}]   ;;  %s908_s3 = inlined_call_operand.vmem [shape: f32[8,1], index: 3, kind: input, shape index: {}]   ;;  %s909_s4 = inlined_call_operand.<no memory space> [shape: f32[1,1], index: 4, kind: input, shape index: {}]   ;;  %s910_s5 = inlined_call_operand.vmem [shape: f32[2,64,256], index: 5, kind: output, shape index: {}]  }
   0x1   :  { %v10_v0 = vstv %s909_s4 }
   0x2   :  { %11 = vst [vmem:[#allocation2] sm:$0x1] %v10_v0 }
   0x3   :  { %s796_s20 = smov 0   ;;  %s798_s21 = smov 0  }
   0x4   :  { %s800_s22 = smov 0   ;;  %s802_s23 = smov 0  }
   0x5   :  { %s804_s24 = smov 0   ;;  %s806_s25 = smov 0  }
   0x6   :  { %s808_s26 = smov 0  }
   0x7 LB: > { %s26_s4 = sadd.s32 1, %s749_s24  ;;  %s29_s27 = sadd.s32 1, %s753_s25  ;;  %s757_s26 = sphi %s808_s26, %s17_s26   ;;  %s753_s25 = sphi %s806_s25, %s917_s25   ;;  %s749_s24 = sphi %s804_s24, %s916_s24   ;;  %s745_s23 = sphi %s802_s23, %s915_s23   ;;  %s741_s22 = sphi %s800_s22, %s914_s22   ;;  %s737_s21 = sphi %s798_s21, %s913_s21   ;;  %s733_s20 = sphi %s796_s20, %s912_s20  }
   0x8   : > { %p27_p0 = scmp.ge.s32.totalorder %s26_s4, 2  ;;  %s580_s28 = sadd.s32 4294967295, %s757_s26  }
   0x9   : > { %p45_p1 = scmp.ne.s32.totalorder %s737_s21, %s733_s20  ;;  %p46_p2 = scmp.eq.s32.totalorder %s757_s26, 0 }
   0xa   : > { %s919_s4 = smov (%p27_p0, %s26_s4), 0  ;;  %s921_s27 = smov (!%p27_p0, %s29_s27), %s753_s25 }
   0xb   : > { %p31_p3 = scmp.ge.s32.totalorder %s921_s27, 2  ;;  %p161_p4 = scmp.eq.s32.totalorder %s580_s28, 3 }
   0xc   : > { %s34_s29 = ssub.s32 %s749_s24, %s919_s4  ;;  %p47_p5 = por %p46_p2, %p45_p1 }
   0xd   : > { %s923_s27 = smov (%p31_p3, %s921_s27), 0  ;;  %p844_p6 = por %p161_p4, %p45_p1 }
   0xe   : > { %s33_s6 = ssub.s32 %s753_s25, %s923_s27  ;;  %s38_s8 = sadd.s32 1, %s737_s21 }
   0xf   : > { %s35_s7 = sor.u32 %s34_s29, %s33_s6  ;;  %p583_p8 = scmp.ge.s32.totalorder %s757_s26, 4 }
  0x10   : > { %p36_p7 = scmp.eq.s32.totalorder %s35_s7, 0 }
  0x11   : > { %195 = sbr.rel (%p583_p8) target bundleno = 34 (0x22), region = 32 }
  0x12   : > { %s852_s9 = scalar_select %p36_p7, %s737_s21, %s38_s8  }
  0x18   : > { %198 = sbr.rel (!%p47_p5) target bundleno = 34 (0x22), region = 36  ;;  %s200_s10 = sand.u32 (%p47_p5), 1, %s737_s21  }
  0x19   : > { %s585_s11 = sshll.u32 (%p47_p5), %s753_s25, 4  ;;  %s584_s12 = sshll.u32 (%p47_p5), %s200_s10, 6 }
  0x1a   : > { %s204_s13 = sadd.s32 (%p47_p5), %s749_s24, %s585_s11  ;;  %s202_s18 = scalar_lea.vmem (%p47_p5), [#allocation3], %s584_s12 }
  0x1b   : > { %s586_s14 = sshll.u32 (%p47_p5), %s204_s13, 3 }
  0x1c   : > { %s206_s17 = scalar_lea.vmem (%p47_p5), %s905_s0, %s586_s14 }
  0x1d   : > { %v248_v1 = vld [vmem:[%s206_s17] sm:$0xff] (%p47_p5)  ;;  %v250_v2 = vld [vmem:[%s206_s17 + $0x10] sm:$0xff] (%p47_p5) }
  0x1e   : > { %v252_v3 = vld [vmem:[%s206_s17 + $0x20] sm:$0xff] (%p47_p5)  ;;  %249 = vst [vmem:[%s202_s18] sm:$0xff] (%p47_p5), %v248_v1  ;;  %251 = vst [vmem:[%s202_s18 + $0x8] sm:$0xff] (%p47_p5), %v250_v2  ;;  %v254_v4 = vld [vmem:[%s206_s17 + $0x30] sm:$0xff] (%p47_p5) }
  0x1f   : > { %253 = vst [vmem:[%s202_s18 + $0x10] sm:$0xff] %v252_v3  ;;  %v256_v5 = vld [vmem:[%s206_s17 + $0x40] sm:$0xff]  ;;  %v258_v6 = vld [vmem:[%s206_s17 + $0x50] sm:$0xff]  ;;  %255 = vst [vmem:[%s202_s18 + $0x18] sm:$0xff] %v254_v4 }
  0x20   : > { %257 = vst [vmem:[%s202_s18 + $0x20] sm:$0xff] %v256_v5  ;;  %259 = vst [vmem:[%s202_s18 + $0x28] sm:$0xff] %v258_v6  ;;  %v260_v7 = vld [vmem:[%s206_s17 + $0x60] sm:$0xff]  ;;  %v262_v8 = vld [vmem:[%s206_s17 + $0x70] sm:$0xff] }
  0x21   : > { %261 = vst [vmem:[%s202_s18 + $0x30] sm:$0xff] %v260_v7  ;;  %263 = vst [vmem:[%s202_s18 + $0x38] sm:$0xff] %v262_v8 }
  0x22 PF: > { %p587_p9 = scmp.ge.s32.totalorder %s757_s26, 1  ;;  %p268_p10 = scmp.lt.s32.totalorder %s757_s26, 5 }
  0x24   : > { %p269_p11 = pnand %p587_p9, %p268_p10 }
  0x25   : > { %s275_s19 = sand.u32 (!%p269_p11), 1, %s733_s20   ;;  %v759_v9 = vmov (!%p269_p11), 0.0|0.0   ;;  %vm760_vm0 = vmmov (!%p269_p11), 0   ;;  %v761_v10 = vmov (!%p269_p11), 0.0   ;;  %v310_v11 = vld [vmem:[%s907_s2] sm:$0xff] (!%p269_p11)  ;;  %v762_v13 = vmov (!%p269_p11), 0  }
  0x26   : > { %272 = sbr.rel (%p269_p11) target bundleno = 330 (0x14a), region = 74  ;;  %625 = vmatprep.subr.bf16.mxu0 (!%p269_p11), %v759_v9  ;;  %s864_s28 = sshll.u32 (!%p269_p11), %s275_s19, 6  ;;  %622 = vmatprep.mubr.msk.f32.mxu0 (!%p269_p11), %vm760_vm0, %v761_v10  ;;  %v404_v12 = vld [vmem:[#allocation2] sm:$0x1] (!%p269_p11)  ;;  %vm316_vm1 = vcmask (!%p269_p11), 523264   ;;  %v410_v33 = vlaneseq (!%p269_p11) }
  0x27   : > { %697 = vset.pattern.permute.xlu0 (!%p269_p11), %v762_v13  ;;  %698 = vset.pattern.permute.xlu1 (!%p269_p11), %v762_v13  ;;  %s277_s7 = scalar_lea.vmem (!%p269_p11), [#allocation3], %s864_s28  ;;  %v391_v19 = vld [vmem:[%s908_s3] sm:$0xff] (!%p269_p11)  ;;  %s300_s12 = scalar_lea.vmem (!%p269_p11), [#allocation4], %s864_s28 }
  0x28   : > { %v302_v14 = vld [vmem:[%s277_s7] sm:$0xff] (!%p269_p11)  ;;  %v303_v15 = vld [vmem:[%s277_s7 + $0x8] sm:$0xff] (!%p269_p11)  ;;  %v304_v16 = vld [vmem:[%s277_s7 + $0x10] sm:$0xff] (!%p269_p11)  ;;  %313 = vperm.xlu0 (!%p269_p11), %697, %v310_v11   ;;  %407 = vperm.xlu1 (!%p269_p11), %698, %v404_v12   ;;  %v411_v37 = vshrl.u32 (!%p269_p11), %v410_v33, 7 }
  0x29   : > { %v626_v17 = vpack.c.bf16 (!%p269_p11), %v303_v15, %v302_v14  ;;  %v305_v18 = vld [vmem:[%s277_s7 + $0x18] sm:$0xff] (!%p269_p11)  ;;  %v306_v21 = vld [vmem:[%s277_s7 + $0x20] sm:$0xff] (!%p269_p11)  ;;  %v307_v22 = vld [vmem:[%s277_s7 + $0x28] sm:$0xff] (!%p269_p11) }
  0x2a   : > { %v629_v20 = vpack.c.bf16 (!%p269_p11), %v305_v18, %v304_v16  ;;  %v632_v23 = vpack.c.bf16 (!%p269_p11), %v307_v22, %v306_v21  ;;  %v308_v24 = vld [vmem:[%s277_s7 + $0x30] sm:$0xff] (!%p269_p11)  ;;  %v309_v25 = vld [vmem:[%s277_s7 + $0x38] sm:$0xff] (!%p269_p11)  ;;  %v412_v40 = vsub.s32 (!%p269_p11), 0, %v411_v37 }
  0x2b   : > { %627 = vmatpush3.bf16.msra.mxu0 (!%p269_p11), %v626_v17  ;;  %v635_v26 = vpack.c.bf16 (!%p269_p11), %v309_v25, %v308_v24  ;;  %v301_v27 = vld [vmem:[%s906_s1] sm:$0xff] (!%p269_p11) }
  0x2c   : > { %628 = vmatprep.subr.bf16.mxu0 (!%p269_p11), %v759_v9  ;;  %394 = vperm.xlu0 (!%p269_p11), %697, %v391_v19  }
  0x2d   : > { %s593_s13 = sshll.u32 (%p844_p6), %s745_s23, 4 }
  0x2e   : > { %s445_s14 = sadd.s32 (%p844_p6), %s741_s22, %s593_s13 }
  0x2f   : > { %630 = vmatpush3.bf16.msra.mxu0 %v629_v20  ;;  %s594_s15 = sshll.u32 (%p844_p6), %s445_s14, 3 }
  0x30   : > { %631 = vmatprep.subr.bf16.mxu0 %v759_v9  ;;  %s447_s18 = scalar_lea.vmem (%p844_p6), %s910_s5, %s594_s15 }
  0x33   : > { %633 = vmatpush3.bf16.msra.mxu0 %v632_v23 }
  0x34   : > { %634 = vmatprep.subr.bf16.mxu0 %v759_v9 }
  0x37   : > { %636 = vmatpush3.bf16.msra.mxu0 %v635_v26 }
  0x3a   : > { %623 = vmatmul.mubr.msk.f32.vlgmr.msra.gmra.mrb[0].mxu0 %vm316_vm1, %v301_v27 }
  0xa7   : > { %v314_v28 = vpop.permute.xlu0 %313  ;;  %v408_v41 = vpop.permute.xlu1 %407 }
  0xa8   : > { %v413_v44 = vrot.slane %v408_v41, %v412_v40 }
  0xab   : > { %v395_v34 = vpop.permute.xlu0 %394 }
 0x10d   : > { %v386_v29 = vpop.f32.mrb[0].mxu0 }
 0x10e   : > { %v387_v30 = vadd.f32 %v386_v29, %v314_v28  ;;  %v624_v31 = vpop.f32.mrb[1].mxu0 }
 0x110   : > { %v390_v32 = vmax.f32 %v387_v30, 0.0 }
 0x112   : > { %v397_v35 = vmul.f32 %v395_v34, %v390_v32 }
 0x114   : > { %v398_v36 = vrot.slane %v397_v35, 4 }
 0x116   : > { %v399_v38 = vadd.f32 %v398_v36, %v397_v35 }
 0x118   : > { %v400_v39 = vrot.slane %v399_v38, 2 }
 0x11a   : > { %v401_v42 = vadd.f32 %v400_v39, %v399_v38 }
 0x11c   : > { %v402_v43 = vrot.slane %v401_v42, 1 }
 0x11e   : > { %v403_v45 = vadd.f32 %v402_v43, %v401_v42 }
 0x120   : > { %v414_v46 = vadd.f32 %v413_v44, %v403_v45 }
 0x122   : > { %v591_v47 = vmul.f32 -1.442695, %v414_v46 }
 0x124   : > { %699 = vpow2.f32 %v591_v47 }
 0x12e   : > { %v700_v48 = vpop.eup %699 }
 0x12f   : > { %v418_v49 = vadd.f32 1.0, %v700_v48 }
 0x131   : > { %701 = vrcp.f32 %v418_v49 }
 0x13b   : > { %v702_v50 = vpop.eup %701  ;;  %443 = sbr.rel (!%p844_p6) target bundleno = 330 (0x14a), region = 82 }
 0x13c   : > { %v421_v51 = vmul.f32 %v702_v50, %v302_v14  ;;  %v422_v52 = vmul.f32 %v702_v50, %v303_v15  ;;  %v423_v53 = vmul.f32 %v702_v50, %v304_v16  ;;  %v424_v54 = vmul.f32 %v702_v50, %v305_v18 }
 0x13d   : > { %v425_v55 = vmul.f32 %v702_v50, %v306_v21  ;;  %v426_v56 = vmul.f32 %v702_v50, %v307_v22  ;;  %v427_v57 = vmul.f32 %v702_v50, %v308_v24  ;;  %v428_v58 = vmul.f32 %v702_v50, %v309_v25 }
 0x13e   : > { %429 = vst [vmem:[%s300_s12] sm:$0xff] %v421_v51  ;;  %430 = vst [vmem:[%s300_s12 + $0x8] sm:$0xff] %v422_v52 }
 0x13f   : > { %431 = vst [vmem:[%s300_s12 + $0x10] sm:$0xff] %v423_v53  ;;  %432 = vst [vmem:[%s300_s12 + $0x18] sm:$0xff] %v424_v54 }
 0x140   : > { %433 = vst [vmem:[%s300_s12 + $0x20] sm:$0xff] %v425_v55  ;;  %434 = vst [vmem:[%s300_s12 + $0x28] sm:$0xff] %v426_v56 }
 0x141   : > { %435 = vst [vmem:[%s300_s12 + $0x30] sm:$0xff] %v427_v57  ;;  %436 = vst [vmem:[%s300_s12 + $0x38] sm:$0xff] %v428_v58 }
 0x145   : > { %v489_v59 = vld [vmem:[%s300_s12] sm:$0xff]  ;;  %v491_v60 = vld [vmem:[%s300_s12 + $0x8] sm:$0xff] }
 0x146   : > { %v493_v61 = vld [vmem:[%s300_s12 + $0x10] sm:$0xff]  ;;  %v495_v62 = vld [vmem:[%s300_s12 + $0x18] sm:$0xff]  ;;  %490 = vst [vmem:[%s447_s18] sm:$0xff] %v489_v59  ;;  %492 = vst [vmem:[%s447_s18 + $0x10] sm:$0xff] %v491_v60 }
 0x147   : > { %v497_v63 = vld [vmem:[%s300_s12 + $0x20] sm:$0xff]  ;;  %v499_v0 = vld [vmem:[%s300_s12 + $0x28] sm:$0xff]  ;;  %494 = vst [vmem:[%s447_s18 + $0x20] sm:$0xff] %v493_v61  ;;  %496 = vst [vmem:[%s447_s18 + $0x30] sm:$0xff] %v495_v62 }
 0x148   : > { %v501_v1 = vld [vmem:[%s300_s12 + $0x30] sm:$0xff]  ;;  %v503_v2 = vld [vmem:[%s300_s12 + $0x38] sm:$0xff]  ;;  %498 = vst [vmem:[%s447_s18 + $0x40] sm:$0xff] %v497_v63  ;;  %500 = vst [vmem:[%s447_s18 + $0x50] sm:$0xff] %v499_v0 }
 0x149   : > { %502 = vst [vmem:[%s447_s18 + $0x60] sm:$0xff] %v501_v1  ;;  %504 = vst [vmem:[%s447_s18 + $0x70] sm:$0xff] %v503_v2 }
 0x14a PF: > { %s17_s26 = sadd.s32 1, %s757_s26   ;;  %s912_s20 = smov %s737_s21 }
 0x14b   : > { %p14_p12 = scmp.ge.s32.totalorder %s17_s26, 6   ;;  %s913_s21 = smov %s852_s9 }
 0x14c   : > { %s914_s22 = smov %s749_s24  ;;  %s915_s23 = smov %s753_s25 }
 0x14d   : > { %s916_s24 = smov %s919_s4  ;;  %s917_s25 = smov %s923_s27 }
 0x14e   :  { %16 = sbr.rel (!%p14_p12) target bundleno = 7 (0x7), region = 151 }

</bundles_post_ra>
